<compile_context>
chip_gen: v7x
topology: tpu7x:2x2x1
jax: 0.10.0
libtpu: 0.0.40
codegen_flags: <defaults>
</compile_context>

<pallas_src>
import jax
import jax.numpy as jnp
import numpy as np
from jax.experimental import pallas as pl
from jax.experimental.pallas import tpu as pltpu


def asp_kernel(x_ref, w1_ref, b1_ref, w2_ref, b2_ref, out_ref):
    blk, t, c = x_ref.shape
    x = x_ref[...]                                           # (blk, T, C) f32
    x2d = x.reshape(blk * t, c)

    # linear1 (Conv1d k=1) + tanh -- bf16 MXU operands, f32 accumulation
    h = jnp.tanh(
        jnp.dot(x2d.astype(jnp.bfloat16), w1_ref[...],
                preferred_element_type=jnp.float32)
        + b1_ref[...]
    )                                                        # (blk*T, Bn_pad) f32

    # linear2 (Conv1d k=1)
    logits = (
        jnp.dot(h.astype(jnp.bfloat16), w2_ref[...],
                preferred_element_type=jnp.float32)
        + b2_ref[...]
    ).reshape(blk, t, c)                                     # (blk, T, C) f32

    # softmax over the time axis (torch dim=2) == axis 1 here
    m = jnp.max(logits, axis=1, keepdims=True)
    e = jnp.exp(logits - m)
    denom = jnp.sum(e, axis=1, keepdims=True)
    alpha = e * pl.reciprocal(denom, approx=True)            # (blk, T, C)

    # attentive statistics (f32); reuse alpha*x for the second moment
    ax = alpha * x
    mean = jnp.sum(ax, axis=1, keepdims=True)                # (blk, 1, C)
    var = jnp.sum(ax * x, axis=1, keepdims=True) - mean * mean
    std = jnp.sqrt(jnp.maximum(var, 1e-9))                   # (blk, 1, C)

    # two lane-aligned row stores -- no lane-axis concatenate
    out_ref[:, 0:1, :] = mean
    out_ref[:, 1:2, :] = std


def _pick_block_b(B, T, C, Bn_pad, budget_bytes=8 << 20):
    """Largest divisor of B whose f32 tile + temporaries fit the VMEM budget,
    preferring >=2 grid steps so both v7x TensorCores stay busy."""
    per_item = T * C * 4 * 8 + T * Bn_pad * 4 * 3
    max_blk = max(1, budget_bytes // max(per_item, 1))
    divs = [d for d in range(1, B + 1) if B % d == 0 and d <= max_blk]
    blk = divs[-1] if divs else 1
    if blk == B and B > 1:
        smaller = [d for d in divs if d < B]
        if smaller:
            blk = smaller[-1]
    return blk


def attentive_stats_pool(x_btc, W1, b1, W2, b2, *, block_b=None):
    """x_btc: (B, T, C).  W1: (Bn, C), b1: (Bn,), W2: (C, Bn), b2: (C,)
    (PyTorch Conv1d k=1 weights squeezed to 2D).  Returns (B, 2*C)."""
    B, T, C = x_btc.shape
    Bn = W1.shape[0]
    Bn_pad = max(128, ((Bn + 127) // 128) * 128)   # full-lane bottleneck

    # pre-transposed, zero-padded, bf16 MXU weights; biases stay f32
    w1 = jnp.zeros((C, Bn_pad), jnp.bfloat16).at[:, :Bn].set(
        W1.T.astype(jnp.bfloat16))
    b1p = jnp.zeros((1, Bn_pad), jnp.float32).at[:, :Bn].set(
        b1.astype(jnp.float32))
    w2 = jnp.zeros((Bn_pad, C), jnp.bfloat16).at[:Bn, :].set(
        W2.T.astype(jnp.bfloat16))
    b2p = b2.astype(jnp.float32)[None, :]

    if block_b is None:
        block_b = _pick_block_b(B, T, C, Bn_pad)
    assert B % block_b == 0
    grid = (B // block_b,)

    x_btc = x_btc.astype(jnp.float32)

    cost = pl.CostEstimate(
        flops=2 * 2 * B * T * C * Bn_pad + 10 * B * T * C,
        transcendentals=B * T * (Bn_pad + C),
        bytes_accessed=(x_btc.size * 4 + w1.size * 2 + w2.size * 2
                        + b1p.size * 4 + b2p.size * 4 + B * 2 * C * 4),
    )

    out = pl.pallas_call(
        asp_kernel,
        out_shape=jax.ShapeDtypeStruct((B, 2, C), jnp.float32),
        grid_spec=pltpu.PrefetchScalarGridSpec(
            num_scalar_prefetch=0,
            grid=grid,
            in_specs=[
                pl.BlockSpec((block_b, T, C), lambda b: (b, 0, 0)),
                pl.BlockSpec((C, Bn_pad), lambda b: (0, 0)),
                pl.BlockSpec((1, Bn_pad), lambda b: (0, 0)),
                pl.BlockSpec((Bn_pad, C), lambda b: (0, 0)),
                pl.BlockSpec((1, C), lambda b: (0, 0)),
            ],
            out_specs=pl.BlockSpec((block_b, 2, C), lambda b: (b, 0, 0)),
        ),
        compiler_params=pltpu.CompilerParams(
            dimension_semantics=("parallel",),
            vmem_limit_bytes=32 * 1024 * 1024,
        ),
        cost_estimate=cost,
    )(x_btc, w1, b1p, w2, b2p)
    # (B, 2, C) -> (B, 2C) == torch.cat([mean, std], dim=1)
    return out.reshape(B, 2 * C)


def reference_nct(x_nct, W1, b1v, W2, b2v):
    """Plain-JAX (f32) mirror of the PyTorch forward (x in NCT layout)."""
    a = jnp.tanh(jnp.einsum("oc,bct->bot", W1, x_nct) + b1v[None, :, None])
    logits = jnp.einsum("oc,bct->bot", W2, a) + b2v[None, :, None]
    alpha = jax.nn.softmax(logits, axis=2)
    mean = jnp.sum(alpha * x_nct, axis=2)
    res = jnp.sum(alpha * x_nct**2, axis=2) - mean**2
    std = jnp.sqrt(jnp.clip(res, 1e-9, None))
    return jnp.concatenate([mean, std], axis=1)


if __name__ == "__main__":
    B, C, T, Bn = 4, 64, 32, 16  # batch, in_dim, time, bottleneck_dim

    key = jax.random.PRNGKey(0)
    kx, kw1, kb1, kw2, kb2 = jax.random.split(key, 5)

    # Input in the PyTorch NCT layout, transposed to (B, T, C) for the kernel.
    x_nct = jax.random.normal(kx, (B, C, T), dtype=jnp.float32)
    x_btc = jnp.transpose(x_nct, (0, 2, 1))

    # Deterministic Conv1d-k=1 parameter init (weights squeezed to 2D).
    bound1 = 1.0 / np.sqrt(C)
    bound2 = 1.0 / np.sqrt(Bn)
    W1 = jax.random.uniform(kw1, (Bn, C), jnp.float32, -bound1, bound1)
    b1v = jax.random.uniform(kb1, (Bn,), jnp.float32, -bound1, bound1)
    W2 = jax.random.uniform(kw2, (C, Bn), jnp.float32, -bound2, bound2)
    b2v = jax.random.uniform(kb2, (C,), jnp.float32, -bound2, bound2)

    out = jax.block_until_ready(
        attentive_stats_pool(x_btc, W1, b1v, W2, b2v))
    ref = jax.block_until_ready(reference_nct(x_nct, W1, b1v, W2, b2v))

    # bf16 MXU operands + approx reciprocal => compare to the f32 reference
    # at bf16-level tolerance (statistics themselves are accumulated in f32).
    np.testing.assert_allclose(np.asarray(out), np.asarray(ref),
                               rtol=2e-2, atol=2e-2)
    print("KERNEL_OK")
</pallas_src>

<mosaic_0001>
module attributes {stable_mosaic.version = 11 : i64} {
  func.func @asp_kernel(%arg0: i32, %arg1: memref<2x32x64xf32, #tpu.memory_space<vmem>>, %arg2: memref<64x128xbf16, #tpu.memory_space<vmem>>, %arg3: memref<1x128xf32, #tpu.memory_space<vmem>>, %arg4: memref<128x64xbf16, #tpu.memory_space<vmem>>, %arg5: memref<1x64xf32, #tpu.memory_space<vmem>>, %arg6: memref<2x2x64xf32, #tpu.memory_space<vmem>>) attributes {dimension_semantics = [#tpu.dimension_semantics<parallel>], iteration_bounds = array<i64: 2>, scalar_prefetch = 0 : i64, scratch_operands = 0 : i64, tpu.core_type = #tpu.core_type<tc>, window_params = [{transform_indices = @transform_0, window_bounds = array<i64: 2, 32, 64>}, {pipeline_mode = #tpu.pipeline_mode<synchronous>, transform_indices = @transform_1, window_bounds = array<i64: 64, 128>}, {pipeline_mode = #tpu.pipeline_mode<synchronous>, transform_indices = @transform_2, window_bounds = array<i64: 1, 128>}, {pipeline_mode = #tpu.pipeline_mode<synchronous>, transform_indices = @transform_3, window_bounds = array<i64: 128, 64>}, {pipeline_mode = #tpu.pipeline_mode<synchronous>, transform_indices = @transform_4, window_bounds = array<i64: 1, 64>}, {transform_indices = @transform_5, window_bounds = array<i64: 2, 2, 64>}]} {
    %c0 = arith.constant 0 : index
    %c0_0 = arith.constant 0 : index
    %c0_1 = arith.constant 0 : index
    %0 = vector.load %arg1[%c0, %c0_0, %c0_1] : memref<2x32x64xf32, #tpu.memory_space<vmem>>, vector<2x32x64xf32>
    %1 = vector.shape_cast %0 : vector<2x32x64xf32> to vector<64x64xf32>
    %2 = arith.truncf %1 : vector<64x64xf32> to vector<64x64xbf16>
    %c0_2 = arith.constant 0 : index
    %c0_3 = arith.constant 0 : index
    %3 = vector.load %arg2[%c0_2, %c0_3] : memref<64x128xbf16, #tpu.memory_space<vmem>>, vector<64x128xbf16>
    %cst = arith.constant dense<0.000000e+00> : vector<64x128xf32>
    %4 = tpu.matmul %2, %3, %cst {dimension_numbers = #tpu.dot_dimension_numbers<[1], [0], [0], [1], [0, 0, 1, 1], [], []>} : vector<64x64xbf16>, vector<64x128xbf16>, vector<64x128xf32> -> vector<64x128xf32>
    %c0_4 = arith.constant 0 : index
    %c0_5 = arith.constant 0 : index
    %5 = vector.load %arg3[%c0_4, %c0_5] : memref<1x128xf32, #tpu.memory_space<vmem>>, vector<1x128xf32>
    %6 = vector.broadcast %5 : vector<1x128xf32> to vector<64x128xf32>
    %7 = arith.addf %4, %6 : vector<64x128xf32>
    %8 = math.tanh %7 : vector<64x128xf32>
    %9 = arith.truncf %8 : vector<64x128xf32> to vector<64x128xbf16>
    %c0_6 = arith.constant 0 : index
    %c0_7 = arith.constant 0 : index
    %10 = vector.load %arg4[%c0_6, %c0_7] : memref<128x64xbf16, #tpu.memory_space<vmem>>, vector<128x64xbf16>
    %cst_8 = arith.constant dense<0.000000e+00> : vector<64x64xf32>
    %11 = tpu.matmul %9, %10, %cst_8 {dimension_numbers = #tpu.dot_dimension_numbers<[1], [0], [0], [1], [0, 0, 1, 1], [], []>} : vector<64x128xbf16>, vector<128x64xbf16>, vector<64x64xf32> -> vector<64x64xf32>
    %c0_9 = arith.constant 0 : index
    %c0_10 = arith.constant 0 : index
    %12 = vector.load %arg5[%c0_9, %c0_10] : memref<1x64xf32, #tpu.memory_space<vmem>>, vector<1x64xf32>
    %13 = vector.broadcast %12 : vector<1x64xf32> to vector<64x64xf32>
    %14 = arith.addf %11, %13 : vector<64x64xf32>
    %15 = vector.shape_cast %14 : vector<64x64xf32> to vector<2x32x64xf32>
    %cst_11 = arith.constant dense<0xFF800000> : vector<2x64xf32>
    %16 = vector.multi_reduction <maximumf>, %15, %cst_11 [1] : vector<2x32x64xf32> to vector<2x64xf32>
    %17 = vector.shape_cast %16 : vector<2x64xf32> to vector<2x1x64xf32>
    %18 = vector.broadcast %17 : vector<2x1x64xf32> to vector<2x32x64xf32>
    %19 = arith.subf %15, %18 : vector<2x32x64xf32>
    %20 = math.exp %19 : vector<2x32x64xf32>
    %cst_12 = arith.constant dense<0.000000e+00> : vector<2x64xf32>
    %21 = vector.multi_reduction <add>, %20, %cst_12 [1] : vector<2x32x64xf32> to vector<2x64xf32>
    %22 = vector.shape_cast %21 : vector<2x64xf32> to vector<2x1x64xf32>
    %23 = tpu.reciprocal %22 {approx = true} : vector<2x1x64xf32> -> vector<2x1x64xf32>
    %24 = vector.broadcast %23 : vector<2x1x64xf32> to vector<2x32x64xf32>
    %25 = arith.mulf %20, %24 : vector<2x32x64xf32>
    %26 = arith.mulf %25, %0 : vector<2x32x64xf32>
    %cst_13 = arith.constant dense<0.000000e+00> : vector<2x64xf32>
    %27 = vector.multi_reduction <add>, %26, %cst_13 [1] : vector<2x32x64xf32> to vector<2x64xf32>
    %28 = vector.shape_cast %27 : vector<2x64xf32> to vector<2x1x64xf32>
    %29 = arith.mulf %26, %0 : vector<2x32x64xf32>
    %cst_14 = arith.constant dense<0.000000e+00> : vector<2x64xf32>
    %30 = vector.multi_reduction <add>, %29, %cst_14 [1] : vector<2x32x64xf32> to vector<2x64xf32>
    %31 = vector.shape_cast %30 : vector<2x64xf32> to vector<2x1x64xf32>
    %32 = arith.mulf %28, %28 : vector<2x1x64xf32>
    %33 = arith.subf %31, %32 : vector<2x1x64xf32>
    %cst_15 = arith.constant 9.99999971E-10 : f32
    %34 = vector.broadcast %cst_15 : f32 to vector<2x1x64xf32>
    %35 = arith.maximumf %33, %34 : vector<2x1x64xf32>
    %36 = math.sqrt %35 : vector<2x1x64xf32>
    %c0_16 = arith.constant 0 : index
    %c0_17 = arith.constant 0 : index
    %c0_18 = arith.constant 0 : index
    %37 = vector.load %arg6[%c0_16, %c0_17, %c0_18] : memref<2x2x64xf32, #tpu.memory_space<vmem>>, vector<2x1x64xf32>
    tpu.vector_store %arg6[%c0_16, %c0_17, %c0_18], %28 {strides = array<i32>} : memref<2x2x64xf32, #tpu.memory_space<vmem>>, vector<2x1x64xf32>,
    %c0_19 = arith.constant 0 : index
    %c1 = arith.constant 1 : index
    %c0_20 = arith.constant 0 : index
    %38 = vector.load %arg6[%c0_19, %c1, %c0_20] : memref<2x2x64xf32, #tpu.memory_space<vmem>>, vector<2x1x64xf32>
    tpu.vector_store %arg6[%c0_19, %c1, %c0_20], %36 {strides = array<i32>} : memref<2x2x64xf32, #tpu.memory_space<vmem>>, vector<2x1x64xf32>,
    return
  }
  func.func @transform_0(%arg0: i32) -> (i32, i32, i32) {
    %c0_i32 = arith.constant 0 : i32
    %c0_i32_0 = arith.constant 0 : i32
    %c0_i32_1 = arith.constant 0 : i32
    return %arg0, %c0_i32, %c0_i32_0 : i32, i32, i32
  }
  func.func @transform_1(%arg0: i32) -> (i32, i32) {
    %c0_i32 = arith.constant 0 : i32
    %c0_i32_0 = arith.constant 0 : i32
    %c0_i32_1 = arith.constant 0 : i32
    return %c0_i32, %c0_i32_0 : i32, i32
  }
  func.func @transform_2(%arg0: i32) -> (i32, i32) {
    %c0_i32 = arith.constant 0 : i32
    %c0_i32_0 = arith.constant 0 : i32
    %c0_i32_1 = arith.constant 0 : i32
    return %c0_i32, %c0_i32_0 : i32, i32
  }
  func.func @transform_3(%arg0: i32) -> (i32, i32) {
    %c0_i32 = arith.constant 0 : i32
    %c0_i32_0 = arith.constant 0 : i32
    %c0_i32_1 = arith.constant 0 : i32
    return %c0_i32, %c0_i32_0 : i32, i32
  }
  func.func @transform_4(%arg0: i32) -> (i32, i32) {
    %c0_i32 = arith.constant 0 : i32
    %c0_i32_0 = arith.constant 0 : i32
    %c0_i32_1 = arith.constant 0 : i32
    return %c0_i32, %c0_i32_0 : i32, i32
  }
  func.func @transform_5(%arg0: i32) -> (i32, i32, i32) {
    %c0_i32 = arith.constant 0 : i32
    %c0_i32_0 = arith.constant 0 : i32
    %c0_i32_1 = arith.constant 0 : i32
    return %arg0, %c0_i32, %c0_i32_0 : i32, i32, i32
  }
}

</mosaic_0001>

<bundles_post_ra>
// kernel: tpu_custom_call.1
= control target key start
LH: loop header
LB: loop body
LE: loop exit
PB: predicated region body
PF: predicated region fallthrough
CT: control target
= control target key end

     0   :  { %10 = vsyncpa [#allocation3], 0  ;;  %s1424_s0 = inlined_call_operand.hbm [shape: f32[4,32,64], index: 0, kind: input, shape index: {}]   ;;  %s1425_s1 = inlined_call_operand.vmem [shape: bf16[64,128], index: 1, kind: input, shape index: {}]   ;;  %s1426_s2 = inlined_call_operand.vmem [shape: f32[1,128], index: 2, kind: input, shape index: {}]   ;;  %s1427_s3 = inlined_call_operand.vmem [shape: bf16[128,64], index: 3, kind: input, shape index: {}]   ;;  %s1428_s4 = inlined_call_operand.vmem [shape: f32[1,64], index: 4, kind: input, shape index: {}]   ;;  %s1429_s5 = inlined_call_operand.hbm [shape: f32[4,2,64], index: 5, kind: output, shape index: {}]  }
   0x1   :  { %12 = vsyncpa [#allocation3 + $0x1], 0 }
   0x2   :  { %13 = vsyncpa [#allocation4], 0 }
   0x3   :  { %15 = vsyncpa [#allocation4 + $0x1], 0  ;;  %s1122_s18 = smov 0   ;;  %s1124_s19 = smov 0  }
   0x4   :  { %s1126_s20 = smov 0   ;;  %s1128_s21 = smov 0  }
   0x5 LB: > { %s1143_s22 = sadd.s32 4294967295, %s1084_s21   ;;  %s790_s23 = sadd.s32 4294967294, %s1084_s21   ;;  %s1084_s21 = sphi %s1128_s21, %s1442_s21   ;;  %s1080_s20 = sphi %s1126_s20, %s1441_s20   ;;  %s1076_s19 = sphi %s1124_s19, %s1440_s19   ;;  %s1072_s18 = sphi %s1122_s18, %s1439_s18  }
   0x6   : > { %s1147_s24 = sadd.s32 1, %s1084_s21   ;;  %s28_s25 = sadd.s32 1, %s1080_s20 }
   0x7   : > { %s25_s26 = ssub.s32 %s1084_s21, %s1147_s24  ;;  %p35_p0 = scmp.ne.s32.totalorder %s1080_s20, %s1076_s19 }
   0x8   : > { %p26_p1 = scmp.eq.s32.totalorder %s25_s26, 0  ;;  %p36_p2 = scmp.eq.s32.totalorder %s1084_s21, 0 }
   0x9   : > { %p41_p3 = scmp.ne.s32.totalorder %s1076_s19, %s1072_s18  ;;  %p42_p4 = scmp.eq.s32.totalorder %s1143_s22, 0 }
   0xa   : > { %s1159_s27 = scalar_select %p26_p1, %s1080_s20, %s28_s25  }
   0xb   : > { %p1161_p5 = por %p36_p2, %p35_p0  ;;  %p1165_p6 = por %p42_p4, %p41_p3 }
   0xc   : > { %p149_p7 = scmp.eq.s32.totalorder %s1143_s22, 1  ;;  %p155_p8 = scmp.eq.s32.totalorder %s790_s23, 1 }
   0xd   : > { %p898_p10 = scmp.lt.s32.totalorder %s1084_s21, 2  ;;  %s187_s7 = sand.u32 1, %s1080_s20  }
   0xe   : > { %p1172_p11 = por %p149_p7, %p35_p0  ;;  %p1176_p12 = por %p155_p8, %p41_p3 }
   0xf   : > { %s824_s8 = sshll.u32 %s1084_s21, 10  ;;  %s793_s9 = sshll.u32 %s187_s7, 6 }
  0x10   : > { %s1433_s30 = scalar_select %p1172_p11, 1, 0 }
  0x11   : > { %s1434_s6 = scalar_select %p1176_p12, 1, 0 }
  0x12   : > { %s1185_s12 = scalar_lea.hbm %s1424_s0, %s824_s8  ;;  %s191_s13 = scalar_lea.vmem [#allocation2], %s793_s9 }
  0x13   : > { %s199_s14 = sshll.u32 %s191_s13, 4  ;;  %p1189_p13 = pnand %p898_p10, %p1161_p5  ;;  %s1193_s14 = int_to_ptr.vmem [resolvable:$true] %s199_s14 }
  0x14   : > { %s1195_s16 = scalar_lea.sflag [#allocation3], %s187_s7  ;;  %s988_s17 = scalar_lea.hbm %s1185_s12, 1024 }
  0x15   : > { %p989_p0 = scmp.ne.s32.totalorder %s1185_s12, %s988_s17  ;;  %p990_p1 = pneg %p1189_p13 }
  0x16   : > { %s993_s26 = scalar_lea.hbm %s1424_s0, 2048  ;;  %p994_p4 = scmp.lt.u32.totalorder %s1185_s12, %s1424_s0 }
  0x17   : > { %p991_p2 = pnand %p990_p1, %p989_p0  ;;  %p995_p5 = scmp.lt.u32.totalorder %s993_s26, %s988_s17 }
  0x18   : > { %p997_p8 = scmp.lt.u32.totalorder %s988_s17, %s1185_s12 }
  0x19   : > { %p992_p3 = pneg %p991_p2  ;;  %p996_p7 = por %p995_p5, %p994_p4 }
  0x1b   : > { %p998_p10 = por %p997_p8, %p996_p7 }
  0x1d   : > { %p999_p9 = pnand %p998_p10, %p992_p3 }
  0x1f   : > { %1002 = shalt.err (!%p999_p9)
}
  0x20   : > { %s1003_s7 = scalar_lea.vmem %s1193_s14, 1024  ;;  %s1086_s9 = smov [#allocation2]  }
  0x21   : > { %p1004_p0 = scmp.ne.s32.totalorder %s1193_s14, %s1003_s7  ;;  %s1008_s10 = sshll.u32 %s1086_s9, 4  ;;  %s1009_s10 = int_to_ptr.vmem [resolvable:$false] %s1008_s10 }
  0x22   : > { %s1010_s11 = scalar_lea.vmem %s1009_s10, 2048  ;;  %p1011_p11 = scmp.lt.s32.totalorder %s1193_s14, %s1009_s10 }
  0x23   : > { %p1006_p2 = pnand %p1004_p0, %p990_p1  ;;  %p1012_p4 = scmp.lt.s32.totalorder %s1010_s11, %s1003_s7 }
  0x25   : > { %p1007_p12 = pneg %p1006_p2  ;;  %p1013_p5 = por %p1012_p4, %p1011_p11 }
  0x27   : > { %p1014_p7 = pnand %p1013_p5, %p1007_p12 }
  0x29   : > { %1017 = shalt.err (!%p1014_p7)
}
  0x2a   : > { %s1087_s13 = smov 128   ;;  %s1088_s17 = smov 8  }
  0x2b   : > { %893 = dma.hbm_to_vmem [thread:$0]  (!%p1189_p13), %s1185_s12, 1024, %s1193_s14, %s1195_s16, %s1087_s13, %s1087_s13, %s1088_s17  }
  0x2c   : > { %p797_p9 = scmp.ge.s32.totalorder %s1084_s21, 1  ;;  %p207_p1 = scmp.lt.s32.totalorder %s1084_s21, 3 }
  0x2e   : > { %p208_p3 = pnand %p797_p9, %p207_p1 }
  0x2f   : > { %s1226_s23 = sand.u32 (!%p208_p3), 1, %s1076_s19  }
  0x30   : > { %211 = sbr.rel (%p208_p3) target bundleno = 653 (0x28d), region = 40  ;;  %s798_s25 = sshll.u32 (!%p208_p3), %s1226_s23, 6 }
  0x31   : > { %s214_s26 = scalar_lea.sflag (!%p208_p3), [#allocation3], %s1226_s23  ;;  %s1230_s28 = scalar_lea.vmem (!%p208_p3), [#allocation2], %s798_s25 }
  0x37   : > { %1063 = dma.done.wait (%p1165_p6), %s214_s26, 1024  }
  0x38   : > { %1065 = vsyncadd (%p1165_p6), %s214_s26, 4294966272  ;;  %v936_v0 = vld [vmem:[%s1425_s1] sm:$0xff]   ;;  %v937_v1 = vld [vmem:[%s1425_s1 + $0x8] sm:$0xff]   ;;  %vm298_vm0 = vcmask 523264   ;;  %s799_s26 = sshll.u32 %s1226_s23, 2  ;;  %vm698_vm1 = vcmask 516096  }
  0x39   : > { %846 = vmatprep.subr.bf16.mxu0 %v936_v0  ;;  %v938_v2 = vld [vmem:[%s1425_s1 + $0x10] sm:$0xff]   ;;  %v1246_v3 = vld [vmem:[%s1230_s28] sm:$0xff]  ;;  %v1249_v4 = vld [vmem:[%s1230_s28 + $0x8] sm:$0xff]  ;;  %s1363_s12 = scalar_lea.vmem [#allocation5], %s799_s26  ;;  %s825_s14 = sshll.u32 %s1143_s22, 6 }
  0x3a   : > { %847 = vmatpush3.bf16.msra.mxu0 %v936_v0  ;;  %v255_v5 = vpack.c.bf16 %v1249_v4, %v1246_v3  ;;  %v939_v6 = vld [vmem:[%s1425_s1 + $0x18] sm:$0xff]   ;;  %v940_v7 = vld [vmem:[%s1427_s3] sm:$0xff]   ;;  %v941_v8 = vld [vmem:[%s1427_s3 + $0x8] sm:$0xff]   ;;  %s717_s15 = sshll.u32 %s1363_s12, 4  ;;  %s704_s22 = scalar_lea.sflag [#allocation4], %s1226_s23  ;;  %s1378_s15 = int_to_ptr.vmem [resolvable:$true] %s717_s15 }
  0x3b   : > { %848 = vmatprep.subr.bf16.mxu0 %v937_v1  ;;  %v1264_v9 = vld [vmem:[%s1230_s28 + $0x10] sm:$0xff]  ;;  %v1267_v10 = vld [vmem:[%s1230_s28 + $0x18] sm:$0xff]  ;;  %862 = vmatprep.subr.bf16.mxu1 %v940_v7  ;;  %v1273_v12 = vld [vmem:[%s1230_s28 + $0x20] sm:$0xff]  ;;  %s1018_s7 = scalar_lea.vmem %s1378_s15, 64  ;;  %p1436_p11 = scmp.ne.s32.totalorder %s1433_s30, 0 }
  0x3c   : > { %854 = vmatprep.mubr.msk.bf16.mxu0 %vm298_vm0, %v255_v5  ;;  %v942_v11 = vld [vmem:[%s1427_s3 + $0x10] sm:$0xff]   ;;  %v1276_v13 = vld [vmem:[%s1230_s28 + $0x28] sm:$0xff]  ;;  %863 = vmatpush3.bf16.msra.mxu1 %v940_v7  ;;  %v256_v14 = vpack.c.bf16 %v1267_v10, %v1264_v9  ;;  %v1288_v17 = vld [vmem:[%s1230_s28 + $0x38] sm:$0xff]  ;;  %p1019_p6 = scmp.ne.s32.totalorder %s1378_s15, %s1018_s7  ;;  %s1089_s29 = smov [#allocation5]  }
  0x3d   : > { %864 = vmatprep.subr.bf16.mxu1 %v941_v8  ;;  %v257_v15 = vpack.c.bf16 %v1276_v13, %v1273_v12  ;;  %v1285_v16 = vld [vmem:[%s1230_s28 + $0x30] sm:$0xff]  ;;  %v943_v19 = vld [vmem:[%s1427_s3 + $0x18] sm:$0xff]   ;;  %v944_v20 = vld [vmem:[%s1427_s3 + $0x20] sm:$0xff]   ;;  %s1376_s28 = scalar_lea.hbm %s1429_s5, %s825_s14  ;;  %s1022_s9 = sshll.u32 %s1089_s29, 4  ;;  %s1023_s9 = int_to_ptr.vmem [resolvable:$false] %s1022_s9 }
  0x3e   : > { %849 = vmatpush3.bf16.msra.mxu0 %v937_v1  ;;  %v258_v18 = vpack.c.bf16 %v1288_v17, %v1285_v16  ;;  %v945_v21 = vld [vmem:[%s1427_s3 + $0x28] sm:$0xff]   ;;  %v946_v22 = vld [vmem:[%s1427_s3 + $0x30] sm:$0xff]   ;;  %v947_v23 = vld [vmem:[%s1427_s3 + $0x38] sm:$0xff]   ;;  %p1020_p12 = pnand %p1019_p6, %p1436_p11  ;;  %s1024_s10 = scalar_lea.vmem %s1023_s9, 128 }
  0x3f   : > { %850 = vmatprep.subr.bf16.mxu0 %v938_v2  ;;  %v800_v24 = vld [vmem:[%s1426_s2] ss:$0 sm:$0xff]  ;;  %p1025_p8 = scmp.lt.s32.totalorder %s1378_s15, %s1023_s9  ;;  %p1026_p10 = scmp.lt.s32.totalorder %s1024_s10, %s1018_s7 }
  0x40   : > { %865 = vmatpush3.bf16.msra.mxu1 %v941_v8  ;;  %v809_v53 = vld [vmem:[%s1428_s4] ss:$0 sm:$0xff]  ;;  %p1021_p13 = pneg %p1020_p12 }
  0x41   : > { %866 = vmatprep.subr.bf16.mxu1 %v942_v11  ;;  %p1027_p0 = por %p1026_p10, %p1025_p8 }
  0x42   : > { %851 = vmatpush3.bf16.msra.mxu0 %v938_v2 }
  0x43   : > { %852 = vmatprep.subr.bf16.mxu0 %v939_v6  ;;  %p1028_p2 = pnand %p1027_p0, %p1021_p13 }
  0x44   : > { %867 = vmatpush3.bf16.msra.mxu1 %v942_v11 }
  0x45   : > { %868 = vmatprep.subr.bf16.mxu1 %v943_v19 }
  0x46   : > { %853 = vmatpush3.bf16.msra.mxu0 %v939_v6 }
  0x48   : > { %869 = vmatpush3.bf16.msra.mxu1 %v943_v19 }
  0x49   : > { %855 = vmatmul.mubr.msk.bf16.vlgmr.msra.gmra.mrb[0].mxu0 %vm298_vm0, %v256_v14  ;;  %870 = vmatprep.subr.bf16.mxu1 %v944_v20 }
  0x4a   : > { %858 = vmatprep.mubr.msk.bf16.mxu0 %vm298_vm0, %v257_v15 }
  0x4c   : > { %871 = vmatpush3.bf16.msra.mxu1 %v944_v20 }
  0x4d   : > { %872 = vmatprep.subr.bf16.mxu1 %v945_v21 }
  0x50   : > { %873 = vmatpush3.bf16.msra.mxu1 %v945_v21 }
  0x51   : > { %859 = vmatmul.mubr.msk.bf16.gmra.mrb[4].mxu0 %vm298_vm0, %v258_v18  ;;  %874 = vmatprep.subr.bf16.mxu1 %v946_v22 }
  0x54   : > { %875 = vmatpush3.bf16.msra.mxu1 %v946_v22 }
  0x55   : > { %876 = vmatprep.subr.bf16.mxu1 %v947_v23 }
  0x58   : > { %877 = vmatpush3.bf16.msra.mxu1 %v947_v23 }
 0x11c   : > { %v856_v25 = vpop.f32.mrb[0].mxu0 }
 0x11d   : > { %v354_v26 = vadd.f32 %v856_v25, %v800_v24  ;;  %v345_v27 = vpop.f32.mrb[1].mxu0 }
 0x11e   : > { %v346_v28 = vadd.f32 %v800_v24, %v345_v27  ;;  %v857_v29 = vpop.f32.mrb[2].mxu0 }
 0x11f   : > { %948 = vtanh.f32 %v354_v26  ;;  %v357_v30 = vadd.f32 %v857_v29, %v800_v24  ;;  %v348_v31 = vpop.f32.mrb[3].mxu0 }
 0x120   : > { %950 = vtanh.f32 %v346_v28  ;;  %v349_v32 = vadd.f32 %v800_v24, %v348_v31 }
 0x121   : > { %952 = vtanh.f32 %v357_v30 }
 0x122   : > { %954 = vtanh.f32 %v349_v32 }
 0x124   : > { %v860_v33 = vpop.f32.mrb[4].mxu0 }
 0x125   : > { %v370_v34 = vadd.f32 %v860_v33, %v800_v24  ;;  %v361_v35 = vpop.f32.mrb[5].mxu0 }
 0x126   : > { %v362_v36 = vadd.f32 %v800_v24, %v361_v35  ;;  %v861_v37 = vpop.f32.mrb[6].mxu0 }
 0x127   : > { %956 = vtanh.f32 %v370_v34  ;;  %v373_v38 = vadd.f32 %v861_v37, %v800_v24  ;;  %v364_v39 = vpop.f32.mrb[7].mxu0 }
 0x128   : > { %958 = vtanh.f32 %v362_v36  ;;  %v365_v40 = vadd.f32 %v800_v24, %v364_v39 }
 0x129   : > { %v949_v41 = vpop.eup %948  ;;  %960 = vtanh.f32 %v373_v38 }
 0x12a   : > { %v951_v42 = vpop.eup %950  ;;  %962 = vtanh.f32 %v365_v40 }
 0x12b   : > { %v953_v43 = vpop.eup %952 }
 0x12c   : > { %v955_v44 = vpop.eup %954  ;;  %v385_v45 = vpack.c.bf16 %v953_v43, %v949_v41 }
 0x12d   : > { %v384_v46 = vpack.c.bf16 %v955_v44, %v951_v42 }
 0x12f   : > { %878 = vmatprep.mubr.bf16.mxu1 %v384_v46 }
 0x130   : > { %879 = vmatmul.mubr.bf16.vlgmr.msra.gmra.mrb[0].mxu1 %v385_v45 }
 0x131   : > { %v957_v47 = vpop.eup %956 }
 0x132   : > { %v959_v48 = vpop.eup %958 }
 0x133   : > { %v961_v49 = vpop.eup %960 }
 0x134   : > { %v963_v50 = vpop.eup %962  ;;  %v387_v51 = vpack.c.bf16 %v961_v49, %v957_v47 }
 0x135   : > { %v386_v52 = vpack.c.bf16 %v963_v50, %v959_v48 }
 0x137   : > { %882 = vmatprep.mubr.bf16.mxu1 %v386_v52 }
 0x138   : > { %883 = vmatmul.mubr.bf16.gmra.mrb[4].mxu1 %v387_v51 }
 0x203   : > { %v880_v54 = vpop.f32.mrb[0].mxu1 }
 0x204   : > { %v502_v55 = vadd.f32 %v880_v54, %v809_v53  ;;  %v493_v56 = vpop.f32.mrb[1].mxu1 }
 0x205   : > { %v494_v57 = vadd.f32 %v809_v53, %v493_v56  ;;  %v881_v58 = vpop.f32.mrb[2].mxu1 }
 0x206   : > { %v526_v59 = vsel %vm298_vm0, %v502_v55, -inf  ;;  %v505_v60 = vadd.f32 %v881_v58, %v809_v53  ;;  %v496_v61 = vpop.f32.mrb[3].mxu1 }
 0x207   : > { %v524_v62 = vsel %vm298_vm0, %v494_v57, -inf  ;;  %v497_v63 = vadd.f32 %v809_v53, %v496_v61 }
 0x208   : > { %v527_v0 = vmax.f32 %v524_v62, %v526_v59  ;;  %v528_v1 = vsel %vm298_vm0, %v505_v60, -inf }
 0x209   : > { %v525_v2 = vsel %vm298_vm0, %v497_v63, -inf }
 0x20a   : > { %v529_v5 = vmax.f32 %v525_v2, %v528_v1 }
 0x20b   : > { %v884_v6 = vpop.f32.mrb[4].mxu1 }
 0x20c   : > { %v530_v7 = vmax.f32 %v527_v0, %v529_v5  ;;  %v518_v8 = vadd.f32 %v884_v6, %v809_v53  ;;  %v509_v11 = vpop.f32.mrb[5].mxu1 }
 0x20d   : > { %v510_v14 = vadd.f32 %v809_v53, %v509_v11  ;;  %v885_v15 = vpop.f32.mrb[6].mxu1 }
 0x20e   : > { %v531_v18 = vrot.slane %v530_v7, 4  ;;  %v539_v19 = vsel %vm298_vm0, %v518_v8, -inf  ;;  %v521_v20 = vadd.f32 %v885_v15, %v809_v53  ;;  %v512_v21 = vpop.f32.mrb[7].mxu1 }
 0x20f   : > { %v537_v22 = vsel %vm298_vm0, %v510_v14, -inf  ;;  %v513_v23 = vadd.f32 %v809_v53, %v512_v21 }
 0x210   : > { %v532_v24 = vmax.f32 %v530_v7, %v531_v18  ;;  %v540_v25 = vmax.f32 %v537_v22, %v539_v19  ;;  %v541_v26 = vsel %vm298_vm0, %v521_v20, -inf }
 0x211   : > { %v538_v27 = vsel %vm298_vm0, %v513_v23, -inf }
 0x212   : > { %v533_v28 = vrot.slane %v532_v24, 2  ;;  %v542_v29 = vmax.f32 %v538_v27, %v541_v26 }
 0x214   : > { %v534_v30 = vmax.f32 %v532_v24, %v533_v28  ;;  %v543_v31 = vmax.f32 %v540_v25, %v542_v29 }
 0x216   : > { %v535_v32 = vrot.slane %v534_v30, 1  ;;  %v544_v33 = vrot.slane %v543_v31, 4 }
 0x218   : > { %v536_v34 = vmax.f32 %v534_v30, %v535_v32  ;;  %v545_v35 = vmax.f32 %v543_v31, %v544_v33 }
 0x21a   : > { %v550_v36 = vsub.f32 %v494_v57, %v536_v34  ;;  %v551_v37 = vsub.f32 %v497_v63, %v536_v34  ;;  %v552_v38 = vsub.f32 %v502_v55, %v536_v34  ;;  %v553_v39 = vsub.f32 %v505_v60, %v536_v34 }
 0x21b   : > { %v546_v40 = vrot.slane %v545_v35, 2 }
 0x21c   : > { %v558_v41 = vmul.f32 1.442695, %v550_v36  ;;  %v560_v42 = vmul.f32 1.442695, %v551_v37  ;;  %v562_v43 = vmul.f32 1.442695, %v552_v38 }
 0x21d   : > { %v564_v44 = vmul.f32 1.442695, %v553_v39  ;;  %v547_v45 = vmax.f32 %v545_v35, %v546_v40 }
 0x21e   : > { %964 = vpow2.f32 %v558_v41 }
 0x21f   : > { %966 = vpow2.f32 %v560_v42  ;;  %v548_v46 = vrot.slane %v547_v45, 1 }
 0x220   : > { %968 = vpow2.f32 %v562_v43 }
 0x221   : > { %970 = vpow2.f32 %v564_v44  ;;  %v549_v47 = vmax.f32 %v547_v45, %v548_v46 }
 0x223   : > { %v554_v48 = vsub.f32 %v510_v14, %v549_v47  ;;  %v555_v49 = vsub.f32 %v513_v23, %v549_v47  ;;  %v556_v50 = vsub.f32 %v518_v8, %v549_v47  ;;  %v557_v51 = vsub.f32 %v521_v20, %v549_v47 }
 0x225   : > { %v566_v52 = vmul.f32 1.442695, %v554_v48  ;;  %v568_v53 = vmul.f32 1.442695, %v555_v49  ;;  %v570_v54 = vmul.f32 1.442695, %v556_v50 }
 0x226   : > { %v572_v55 = vmul.f32 1.442695, %v557_v51 }
 0x227   : > { %972 = vpow2.f32 %v566_v52 }
 0x228   : > { %v965_v56 = vpop.eup %964  ;;  %974 = vpow2.f32 %v568_v53 }
 0x229   : > { %v967_v57 = vpop.eup %966  ;;  %v574_v58 = vsel %vm298_vm0, %v965_v56, 0.0  ;;  %976 = vpow2.f32 %v570_v54 }
 0x22a   : > { %v969_v59 = vpop.eup %968  ;;  %v575_v60 = vsel %vm298_vm0, %v967_v57, 0.0  ;;  %978 = vpow2.f32 %v572_v55 }
 0x22b   : > { %v971_v61 = vpop.eup %970  ;;  %v576_v62 = vadd.f32 %v575_v60, %v574_v58  ;;  %v577_v63 = vsel %vm298_vm0, %v969_v59, 0.0 }
 0x22c   : > { %v579_v1 = vsel %vm298_vm0, %v971_v61, 0.0 }
 0x22d   : > { %v578_v0 = vadd.f32 %v577_v63, %v576_v62 }
 0x22f   : > { %v580_v2 = vadd.f32 %v579_v1, %v578_v0 }
 0x231   : > { %v973_v5 = vpop.eup %972  ;;  %v581_v6 = vrot.slane %v580_v2, 4 }
 0x232   : > { %v975_v7 = vpop.eup %974  ;;  %v587_v8 = vsel %vm298_vm0, %v973_v5, 0.0 }
 0x233   : > { %v977_v11 = vpop.eup %976  ;;  %v582_v14 = vadd.f32 %v581_v6, %v580_v2  ;;  %v588_v15 = vsel %vm298_vm0, %v975_v7, 0.0 }
 0x234   : > { %v979_v18 = vpop.eup %978  ;;  %v589_v19 = vadd.f32 %v588_v15, %v587_v8  ;;  %v590_v21 = vsel %vm298_vm0, %v977_v11, 0.0 }
 0x235   : > { %v583_v20 = vrot.slane %v582_v14, 2  ;;  %v592_v24 = vsel %vm298_vm0, %v979_v18, 0.0 }
 0x236   : > { %v591_v22 = vadd.f32 %v590_v21, %v589_v19 }
 0x237   : > { %v584_v23 = vadd.f32 %v583_v20, %v582_v14 }
 0x238   : > { %v593_v25 = vadd.f32 %v592_v24, %v591_v22 }
 0x239   : > { %v585_v26 = vrot.slane %v584_v23, 1 }
 0x23a   : > { %v594_v27 = vrot.slane %v593_v25, 4 }
 0x23b   : > { %v586_v28 = vadd.f32 %v585_v26, %v584_v23 }
 0x23c   : > { %v595_v29 = vadd.f32 %v594_v27, %v593_v25 }
 0x23d   : > { %980 = vrcp.f32 %v586_v28 }
 0x23e   : > { %v596_v30 = vrot.slane %v595_v29, 2 }
 0x240   : > { %v597_v31 = vadd.f32 %v596_v30, %v595_v29 }
 0x242   : > { %v598_v32 = vrot.slane %v597_v31, 1 }
 0x244   : > { %v599_v33 = vadd.f32 %v598_v32, %v597_v31 }
 0x246   : > { %982 = vrcp.f32 %v599_v33 }
 0x247   : > { %v981_v34 = vpop.eup %980 }
 0x248   : > { %v602_v35 = vmul.f32 %v981_v34, %v965_v56  ;;  %v603_v36 = vmul.f32 %v981_v34, %v967_v57  ;;  %v604_v37 = vmul.f32 %v981_v34, %v969_v59  ;;  %v605_v38 = vmul.f32 %v981_v34, %v971_v61 }
 0x24a   : > { %v610_v39 = vmul.f32 %v602_v35, %v1246_v3  ;;  %v611_v40 = vmul.f32 %v603_v36, %v1249_v4  ;;  %v612_v41 = vmul.f32 %v604_v37, %v1264_v9  ;;  %v613_v42 = vmul.f32 %v605_v38, %v1267_v10 }
 0x24c   : > { %v618_v43 = vsel %vm298_vm0, %v610_v39, 0.0  ;;  %v619_v44 = vsel %vm298_vm0, %v611_v40, 0.0  ;;  %v644_v46 = vmul.f32 %v610_v39, %v1246_v3  ;;  %v645_v47 = vmul.f32 %v611_v40, %v1249_v4 }
 0x24d   : > { %v620_v45 = vadd.f32 %v619_v44, %v618_v43  ;;  %v646_v48 = vmul.f32 %v612_v41, %v1264_v9  ;;  %v621_v49 = vsel %vm298_vm0, %v612_v41, 0.0  ;;  %v647_v50 = vmul.f32 %v613_v42, %v1267_v10 }
 0x24e   : > { %v652_v52 = vsel %vm298_vm0, %v644_v46, 0.0  ;;  %v653_v53 = vsel %vm298_vm0, %v645_v47, 0.0  ;;  %v623_v55 = vsel %vm298_vm0, %v613_v42, 0.0 }
 0x24f   : > { %v622_v51 = vadd.f32 %v621_v49, %v620_v45  ;;  %v654_v56 = vadd.f32 %v653_v53, %v652_v52  ;;  %v655_v57 = vsel %vm298_vm0, %v646_v48, 0.0  ;;  %v657_v60 = vsel %vm298_vm0, %v647_v50, 0.0 }
 0x250   : > { %v983_v54 = vpop.eup %982 }
 0x251   : > { %v624_v3 = vadd.f32 %v623_v55, %v622_v51  ;;  %v606_v58 = vmul.f32 %v983_v54, %v973_v5  ;;  %v607_v4 = vmul.f32 %v983_v54, %v975_v7  ;;  %v608_v59 = vmul.f32 %v983_v54, %v977_v11 }
 0x252   : > { %v656_v9 = vadd.f32 %v655_v57, %v654_v56  ;;  %v609_v61 = vmul.f32 %v983_v54, %v979_v18 }
 0x253   : > { %v625_v10 = vrot.slane %v624_v3, 4  ;;  %v614_v62 = vmul.f32 %v606_v58, %v1273_v12  ;;  %v615_v63 = vmul.f32 %v607_v4, %v1276_v13  ;;  %v616_v0 = vmul.f32 %v608_v59, %v1285_v16 }
 0x254   : > { %v658_v1 = vadd.f32 %v657_v60, %v656_v9  ;;  %v617_v6 = vmul.f32 %v609_v61, %v1288_v17 }
 0x255   : > { %v626_v2 = vadd.f32 %v625_v10, %v624_v3  ;;  %v631_v8 = vsel %vm298_vm0, %v614_v62, 0.0  ;;  %v632_v5 = vsel %vm298_vm0, %v615_v63, 0.0  ;;  %v648_v14 = vmul.f32 %v614_v62, %v1273_v12 }
 0x256   : > { %v659_v7 = vrot.slane %v658_v1, 4  ;;  %v633_v11 = vadd.f32 %v632_v5, %v631_v8  ;;  %v634_v18 = vsel %vm298_vm0, %v616_v0, 0.0  ;;  %v649_v19 = vmul.f32 %v615_v63, %v1276_v13 }
 0x257   : > { %v627_v15 = vrot.slane %v626_v2, 2  ;;  %v650_v20 = vmul.f32 %v616_v0, %v1285_v16  ;;  %v665_v23 = vsel %vm298_vm0, %v648_v14, 0.0  ;;  %v636_v25 = vsel %vm298_vm0, %v617_v6, 0.0 }
 0x258   : > { %v660_v21 = vadd.f32 %v659_v7, %v658_v1  ;;  %v635_v22 = vadd.f32 %v634_v18, %v633_v11  ;;  %v651_v26 = vmul.f32 %v617_v6, %v1288_v17  ;;  %v666_v27 = vsel %vm298_vm0, %v649_v19, 0.0 }
 0x259   : > { %v628_v24 = vadd.f32 %v627_v15, %v626_v2  ;;  %v667_v29 = vadd.f32 %v666_v27, %v665_v23  ;;  %v668_v13 = vsel %vm298_vm0, %v650_v20, 0.0 }
 0x25a   : > { %v661_v12 = vrot.slane %v660_v21, 2  ;;  %v637_v28 = vadd.f32 %v636_v25, %v635_v22  ;;  %v670_v34 = vsel %vm298_vm0, %v651_v26, 0.0 }
 0x25b   : > { %v629_v30 = vrot.slane %v628_v24, 1  ;;  %v669_v32 = vadd.f32 %v668_v13, %v667_v29 }
 0x25c   : > { %v662_v31 = vadd.f32 %v661_v12, %v660_v21  ;;  %v638_v16 = vrot.slane %v637_v28, 4 }
 0x25d   : > { %v630_v33 = vadd.f32 %v629_v30, %v628_v24  ;;  %v671_v37 = vadd.f32 %v670_v34, %v669_v32 }
 0x25e   : > { %v663_v35 = vrot.slane %v662_v31, 1  ;;  %v639_v36 = vadd.f32 %v638_v16, %v637_v28 }
 0x25f   : > { %v678_v17 = vmul.f32 %v630_v33, %v630_v33  ;;  %699 = vst.msk [vmem:[%s1363_s12] sm:$0x1] %vm698_vm1, %v630_v33  ;;  %v672_v40 = vrot.slane %v671_v37, 4 }
 0x260   : > { %v664_v38 = vadd.f32 %v663_v35, %v662_v31  ;;  %v640_v39 = vrot.slane %v639_v36, 2 }
 0x261   : > { %v673_v43 = vadd.f32 %v672_v40, %v671_v37 }
 0x262   : > { %v680_v41 = vsub.f32 %v664_v38, %v678_v17  ;;  %v641_v42 = vadd.f32 %v640_v39, %v639_v36 }
 0x263   : > { %v674_v46 = vrot.slane %v673_v43, 2 }
 0x264   : > { %v682_v44 = vmax.f32 %v680_v41, 1e-09  ;;  %v642_v45 = vrot.slane %v641_v42, 1 }
 0x265   : > { %v675_v48 = vadd.f32 %v674_v46, %v673_v43 }
 0x266   : > { %v643_v47 = vadd.f32 %v642_v45, %v641_v42  ;;  %984 = vrsqrt.f32 %v682_v44  ;;  %vm686_vm2 = vcmp.eq.f32.partialorder %v682_v44, inf  ;;  %v689_v56 = vand.u32 2147483648, %v682_v44 }
 0x267   : > { %v676_v49 = vrot.slane %v675_v48, 1  ;;  %vm688_vm3 = vcmp.eq.f32.partialorder %v682_v44, 0.0 }
 0x268   : > { %v679_v50 = vmul.f32 %v643_v47, %v643_v47  ;;  %700 = vst.msk [vmem:[%s1363_s12 + $0x2] sm:$0x1] %vm698_vm1, %v643_v47 }
 0x269   : > { %v677_v51 = vadd.f32 %v676_v49, %v675_v48 }
 0x26b   : > { %v681_v52 = vsub.f32 %v677_v51, %v679_v50 }
 0x26d   : > { %v683_v53 = vmax.f32 %v681_v52, 1e-09 }
 0x26f   : > { %986 = vrsqrt.f32 %v683_v53  ;;  %vm693_vm4 = vcmp.eq.f32.partialorder %v683_v53, inf  ;;  %v696_v59 = vand.u32 2147483648, %v683_v53  ;;  %vm695_vm5 = vcmp.eq.f32.partialorder %v683_v53, 0.0 }
 0x270   : > { %v985_v54 = vpop.eup %984 }
 0x271   : > { %v685_v55 = vmul.f32 %v985_v54, %v682_v44 }
 0x273   : > { %v687_v57 = vsel %vm686_vm2, %v682_v44, %v685_v55 }
 0x274   : > { %v690_v3 = vsel %vm688_vm3, %v689_v56, %v687_v57 }
 0x275   : > { %701 = vst.msk [vmem:[%s1363_s12 + $0x1] sm:$0x1] %vm698_vm1, %v690_v3 }
 0x279   : > { %v987_v58 = vpop.eup %986 }
 0x27a   : > { %v692_v4 = vmul.f32 %v987_v58, %v683_v53 }
 0x27c   : > { %v694_v9 = vsel %vm693_vm4, %v683_v53, %v692_v4 }
 0x27d   : > { %v697_v60 = vsel %vm695_vm5, %v696_v59, %v694_v9 }
 0x27e   : > { %702 = vst.msk [vmem:[%s1363_s12 + $0x3] sm:$0x1] %vm698_vm1, %v697_v60 }
 0x27f   : > { %1031 = shalt.err (!%p1028_p2)
}
 0x280   : > { %s1032_s11 = scalar_lea.hbm %s1376_s28, 64  ;;  %s1036_s25 = scalar_lea.hbm %s1429_s5, 128 }
 0x281   : > { %p1033_p4 = scmp.ne.s32.totalorder %s1376_s28, %s1032_s11  ;;  %p1037_p9 = scmp.lt.u32.totalorder %s1376_s28, %s1429_s5 }
 0x282   : > { %p1038_p1 = scmp.lt.u32.totalorder %s1036_s25, %s1032_s11  ;;  %p1040_p6 = scmp.lt.u32.totalorder %s1032_s11, %s1376_s28 }
 0x283   : > { %p1034_p5 = pnand %p1033_p4, %p1436_p11 }
 0x284   : > { %p1039_p3 = por %p1038_p1, %p1037_p9 }
 0x285   : > { %p1035_p7 = pneg %p1034_p5 }
 0x286   : > { %p1041_p12 = por %p1040_p6, %p1039_p3 }
 0x288   : > { %p1042_p13 = pnand %p1041_p12, %p1035_p7 }
 0x28a   : > { %1045 = shalt.err (!%p1042_p13)
}
 0x28b   : > { %s1090_s14 = smov 32   ;;  %s1091_s16 = smov 2  }
 0x28c   : > { %888 = dma.vmem_to_hbm [thread:$0]  (%p1436_p11), %s1378_s15, 64, %s1376_s28, %s704_s22, %s1090_s14, %s1090_s14, %s1091_s16  }
 0x28d PF: > { %s732_s8 = sand.u32 1, %s1072_s18   ;;  %p1437_p8 = scmp.ne.s32.totalorder %s1434_s6, 0 }
 0x28e   : > { %p1438_p10 = scmp.ge.s32.totalorder %s1084_s21, 2  ;;  %s733_s7 = scalar_lea.sflag [#allocation4], %s732_s8 }
 0x290   : > { %p895_p0 = pnand %p1438_p10, %p1437_p8 }
 0x292   : > { %1067 = dma.done.wait (!%p895_p0), %s733_s7, 64  }
 0x293   : > { %1069 = vsyncadd (!%p895_p0), %s733_s7, 4294967232  ;;  %p18_p2 = scmp.ge.s32.totalorder %s1147_s24, 4   ;;  %s1439_s18 = smov %s1076_s19 }
 0x294   : > { %s1440_s19 = smov %s1080_s20  ;;  %s1441_s20 = smov %s1159_s27 }
 0x295   : > { %s1442_s21 = smov %s1147_s24  ;;  %20 = sbr.rel (!%p18_p2) target bundleno = 5 (0x5), region = 85 }
 0x29c   :  { %738 = vsyncpa [#allocation3], 1 }
 0x29d   :  { %740 = vsyncpa [#allocation3 + $0x1], 1 }
 0x29e   :  { %741 = vsyncpa [#allocation4], 1 }
 0x29f   :  { %743 = vsyncpa [#allocation4 + $0x1], 1 }

</bundles_post_ra>
